<compile_context>
chip_gen: v7x
topology: tpu7x:2x2x1
jax: 0.10.0
libtpu: 0.0.40
codegen_flags: <defaults>
</compile_context>

<pallas_src>
import math
import functools

import numpy as np
import jax
import jax.numpy as jnp
from jax import lax
from jax.experimental import pallas as pl
from jax.experimental.pallas import tpu as pltpu


# ----------------------------------------------------------------------------
# Parameter / constant construction (deterministic, in-script)
# ----------------------------------------------------------------------------
def _gaussian_1d(kernlen, nsig):
    """1-D factor of _get_kernel(): sqrt(outer(k,k))/sum == outer(g,g) with
    g = sqrt(k)/sum(sqrt(k)).  norm.cdf replicated via erf (no scipy)."""
    interval = (2 * nsig + 1.0) / kernlen
    xs = np.linspace(-nsig - interval / 2.0, nsig + interval / 2.0, kernlen + 1)
    cdf = np.array([0.5 * (1.0 + math.erf(v / math.sqrt(2.0))) for v in xs])
    kern1d = np.diff(cdf)
    g = np.sqrt(kern1d)
    return (g / g.sum()).astype(np.float32)


def init_params(key, cin, cout, region_num, hidden_scale):
    hidden = hidden_scale * region_num
    k1, k2, k3, k4 = jax.random.split(key, 4)
    return {
        # Conv2d(cin, hidden, 1)
        "w1": 0.1 * jax.random.normal(k1, (hidden, cin), jnp.float32),
        "b1": 0.05 * jax.random.normal(k2, (hidden,), jnp.float32),
        # Conv2d(hidden, region_num*cin*cout, 1, groups=region_num)
        "w2": 0.1 * jax.random.normal(
            k3, (region_num * cin * cout, hidden // region_num), jnp.float32),
        "b2": 0.05 * jax.random.normal(k4, (region_num * cin * cout,), jnp.float32),
        # BatchNorm2d(cout) default affine init
        "bn_gamma": jnp.ones((cout,), jnp.float32),
        "bn_beta": jnp.zeros((cout,), jnp.float32),
    }


# ----------------------------------------------------------------------------
# Plain-JAX glue
# ----------------------------------------------------------------------------
def adaptive_avg_pool2d(x, out_size):
    """PyTorch AdaptiveAvgPool2d semantics (floor/ceil bin edges)."""
    B, C, H, W = x.shape

    def bounds(n, m):
        return [(int(math.floor(i * n / m)), int(math.ceil((i + 1) * n / m)))
                for i in range(m)]

    hb, wb = bounds(H, out_size), bounds(W, out_size)
    rows = []
    for hs, he in hb:
        cols = [jnp.mean(x[:, :, hs:he, ws:we], axis=(2, 3)) for ws, we in wb]
        rows.append(jnp.stack(cols, axis=-1))
    return jnp.stack(rows, axis=-2)  # (B, C, out, out)


def _im2col(xpad, k, H, W):
    """(B, C, H+k-1, W+k-1) -> (B, k*k*C, H*W); row index = tap*C + channel."""
    taps = []
    for dy in range(k):
        for dx in range(k):
            taps.append(xpad[:, :, dy:dy + H, dx:dx + W])
    p = jnp.stack(taps, axis=1)  # (B, k*k, C, H, W)
    B, T, C, _, _ = p.shape
    return p.reshape(B, T * C, H * W)


def _pick_batch_tile(b, max_bt=8):
    for bt in range(min(b, max_bt), 0, -1):
        if b % bt == 0:
            return bt
    return 1


def _pick_hw_tile(hw, max_tile=1024):
    if hw <= max_tile:
        return hw
    t = max_tile - (max_tile % 128)
    while t >= 128:
        if hw % t == 0:
            return t
        t -= 128
    return hw  # fallback: single block


def _choose_tiles(B, RC, KKCp, HW, cout, budget_bytes=8 * 1024 * 1024):
    """Pick (Bt, HWt) so the double-buffered per-step VMEM stays well under the
    default scoped VMEM on every generation (16 MiB v5e, 32 MiB v6e/v7x)."""
    Bt = _pick_batch_tile(B)
    HWt = _pick_hw_tile(HW)

    def step_bytes(bt, hwt):
        wm = bt * RC * KKCp * 2          # bf16
        pt = bt * KKCp * hwt * 2         # bf16
        gd = bt * 1 * hwt * 4            # f32
        ot = bt * cout * hwt * 4         # f32
        st = 2 * bt * cout * 4           # stats accumulators
        return 2 * (wm + pt + gd + ot) + st

    while step_bytes(Bt, HWt) > budget_bytes and HWt % 256 == 0 and HWt > 128:
        HWt //= 2
    while step_bytes(Bt, HWt) > budget_bytes and Bt % 2 == 0 and Bt > 1:
        Bt //= 2
    return Bt, HWt


def _prepare_core_inputs(x, y, params, *, cout, kernel_size, region_num,
                         hidden_scale, guide_ksize, conv_padding):
    """Everything up to (and excluding) the hot per-pixel work: dynamic filter
    generation, im2col of feat (bf16, padded K), and the HAGuide holistic
    attention map (separable Gaussian blur, tiny, in plain JAX)."""
    B, Cin, H, W = x.shape
    if conv_padding is None:
        conv_padding = kernel_size // 2

    # F.interpolate(y, size=x.shape[2:], mode='bilinear', align_corners=False)
    if y.shape[2:] != (H, W):
        y = jax.image.resize(y, (y.shape[0], y.shape[1], H, W),
                             method="bilinear", antialias=False)

    # --- conv_kernel branch: dynamic filter generation (tiny, plain JAX) ---
    pooled = adaptive_avg_pool2d(x, kernel_size)                    # (B, Cin, K, K)
    hid = jnp.einsum("oc,bcij->boij", params["w1"], pooled) \
        + params["b1"][None, :, None, None]
    hid = jax.nn.sigmoid(hid)                                       # (B, hidden, K, K)
    hidden = hidden_scale * region_num
    gin = hidden // region_num
    gout = Cin * cout
    groups_out = []
    for g in range(region_num):                                     # grouped 1x1 conv
        wg = params["w2"][g * gout:(g + 1) * gout]
        bg = params["b2"][g * gout:(g + 1) * gout]
        hg = hid[:, g * gin:(g + 1) * gin]
        groups_out.append(jnp.einsum("oc,bcij->boij", wg, hg)
                          + bg[None, :, None, None])
    kgen = jnp.concatenate(groups_out, axis=1)                      # (B, R*Cin*Cout, K, K)

    RC = region_num * cout
    KKC = kernel_size * kernel_size * Cin
    KKCp = ((KKC + 7) // 8) * 8                                     # pad contraction dim
    dynk = kgen.reshape(B, RC, Cin, kernel_size, kernel_size)       # == kernel.view(-1,Cin,K,K)
    wmat = dynk.transpose(0, 1, 3, 4, 2).reshape(B, RC, KKC)        # (B, RC, K*K*Cin)
    wmat = jnp.pad(wmat, ((0, 0), (0, 0), (0, KKCp - KKC))).astype(jnp.bfloat16)

    # --- im2col for the dynamic cross-correlation (xcorr_fast, groups=batch) ---
    pad = conv_padding
    xpad = jnp.pad(x, ((0, 0), (0, 0), (pad, pad), (pad, pad)))
    Ho = H + 2 * pad - kernel_size + 1
    Wo = W + 2 * pad - kernel_size + 1
    assert (Ho, Wo) == (H, W), "guide map requires 'same' correlation output"
    # TODO(synk): for large H,W/Cin keep padded x in HBM (memory_space=pl.ANY) and
    # build the K*K taps in-kernel from a haloed VMEM tile instead of materializing
    # the K*K-times-larger im2col array in HBM.
    patches = _im2col(xpad, kernel_size, H, W)                      # (B, K*K*Cin, HW)
    patches = jnp.pad(patches, ((0, 0), (0, KKCp - KKC), (0, 0))).astype(jnp.bfloat16)

    # --- HAGuide: separable Gaussian blur + min-max norm + max(pred), tiny ---
    gpad = guide_ksize // 2
    pred_sig = jax.nn.sigmoid(y)                                    # (B, 1, H, W)
    sigma = 0.3 * ((guide_ksize - 1) * 0.5 - 1) + 0.8
    g1d = jnp.asarray(_gaussian_1d(guide_ksize, sigma))
    kv = g1d.reshape(1, 1, guide_ksize, 1)
    kh = g1d.reshape(1, 1, 1, guide_ksize)
    dn = ("NCHW", "OIHW", "NCHW")
    sa = lax.conv_general_dilated(pred_sig, kv, (1, 1),
                                  ((gpad, gpad), (0, 0)), dimension_numbers=dn)
    sa = lax.conv_general_dilated(sa, kh, (1, 1),
                                  ((0, 0), (gpad, gpad)), dimension_numbers=dn)
    mx = jnp.max(sa, axis=(2, 3), keepdims=True)
    mn = jnp.min(sa, axis=(2, 3), keepdims=True)
    sa_n = (sa - mn) / (mx - mn + 1e-8)                             # min_max_norm
    h = jnp.maximum(sa_n, pred_sig)                                 # holistic soft attention
    HW = H * W
    guide = h.reshape(B, 1, HW).astype(jnp.float32)

    meta = dict(B=B, H=H, W=W, HW=HW, RC=RC, KKCp=KKCp)
    return wmat, patches, guide, meta


# ----------------------------------------------------------------------------
# Pallas kernels
# ----------------------------------------------------------------------------
def _sconv_core_kernel(wmat_ref, patch_ref, guide_ref, out_ref, sum_ref, ssq_ref,
                       *, cout):
    # per (batch-block, hw-tile) grid step:
    #   wmat_ref : (Bt, R*Cout, KKCp)  bf16 dynamic filters (im2col layout, K padded)
    #   patch_ref: (Bt, KKCp, HWt)     bf16 im2col patches of feat
    #   guide_ref: (Bt, 1, HWt)        f32 holistic soft attention h
    #   out_ref  : (Bt, Cout, HWt)     f32 region-selected dynamic conv output
    #   sum_ref  : (Bt, Cout, 1)       f32 per-sample per-channel sum     (BN partial)
    #   ssq_ref  : (Bt, Cout, 1)       f32 per-sample per-channel sum-sq  (BN partial)
    @pl.when(pl.program_id(1) == 0)
    def _():
        sum_ref[...] = jnp.zeros_like(sum_ref)
        ssq_ref[...] = jnp.zeros_like(ssq_ref)

    # per-sample dynamic cross-correlation as a batched im2col matmul (f32 acc)
    acc = jnp.einsum("brk,bkh->brh", wmat_ref[...], patch_ref[...],
                     preferred_element_type=jnp.float32)        # (Bt, 2*Cout, HWt)

    h = guide_ref[...]                                           # (Bt, 1, HWt)
    mask0 = h >= (1.0 - h)              # argmax over [h, 1-h]; ties -> region 0
    sel = jnp.where(mask0, acc[:, :cout, :], acc[:, cout:, :])   # asign_index

    out_ref[...] = sel
    sum_ref[...] += jnp.sum(sel, axis=2, keepdims=True)
    ssq_ref[...] += jnp.sum(sel * sel, axis=2, keepdims=True)


def _bn_relu_kernel(x_ref, scale_ref, shift_ref, o_ref):
    # x_ref: (1, Cout, HWt); scale/shift: (1, Cout, 1) pre-folded BN affine
    o_ref[...] = jnp.maximum(x_ref[...] * scale_ref[...] + shift_ref[...], 0.0)


# ----------------------------------------------------------------------------
# SConvNR forward
# ----------------------------------------------------------------------------
def sconv_nr_forward(x, y, params, *, cout, kernel_size, region_num=2,
                     hidden_scale=8, guide_ksize=5, conv_padding=None):
    # The original module's HAGuide produces a 2-channel guide, so asign_index only
    # works with region_num == 2 in PyTorch as well.
    assert region_num == 2, "SConvNR guide path only supports region_num=2"

    wmat, patches, guide, meta = _prepare_core_inputs(
        x, y, params, cout=cout, kernel_size=kernel_size, region_num=region_num,
        hidden_scale=hidden_scale, guide_ksize=guide_ksize, conv_padding=conv_padding)
    B, H, W, HW = meta["B"], meta["H"], meta["W"], meta["HW"]
    RC, KKCp = meta["RC"], meta["KKCp"]

    Bt, HWt = _choose_tiles(B, RC, KKCp, HW, cout)
    nb, nhw = B // Bt, HW // HWt

    core_flops = 2 * B * RC * KKCp * HW
    core_bytes = int(wmat.size * 2 + patches.size * 2 + guide.size * 4
                     + B * cout * HW * 4 + 2 * B * cout * 4)

    core_out, csum, cssq = pl.pallas_call(
        functools.partial(_sconv_core_kernel, cout=cout),
        out_shape=(jax.ShapeDtypeStruct((B, cout, HW), jnp.float32),
                   jax.ShapeDtypeStruct((B, cout, 1), jnp.float32),
                   jax.ShapeDtypeStruct((B, cout, 1), jnp.float32)),
        grid_spec=pltpu.PrefetchScalarGridSpec(
            num_scalar_prefetch=0,
            grid=(nb, nhw),
            in_specs=[
                pl.BlockSpec((Bt, RC, KKCp), lambda bi, hi: (bi, 0, 0)),
                pl.BlockSpec((Bt, KKCp, HWt), lambda bi, hi: (bi, 0, hi)),
                pl.BlockSpec((Bt, 1, HWt), lambda bi, hi: (bi, 0, hi)),
            ],
            out_specs=[
                pl.BlockSpec((Bt, cout, HWt), lambda bi, hi: (bi, 0, hi)),
                pl.BlockSpec((Bt, cout, 1), lambda bi, hi: (bi, 0, 0)),   # resident acc
                pl.BlockSpec((Bt, cout, 1), lambda bi, hi: (bi, 0, 0)),   # resident acc
            ],
        ),
        compiler_params=pltpu.CompilerParams(
            dimension_semantics=("parallel", "arbitrary")),
        cost_estimate=pl.CostEstimate(flops=core_flops, transcendentals=0,
                                      bytes_accessed=core_bytes),
    )(wmat, patches, guide)

    # --- BatchNorm2d (training-mode batch statistics) from the fused partial sums ---
    n = B * HW
    total = jnp.sum(csum[:, :, 0], axis=0)                        # (cout,)
    total_sq = jnp.sum(cssq[:, :, 0], axis=0)                     # (cout,)
    mean = total / n
    var = jnp.maximum(total_sq / n - mean * mean, 0.0)            # biased var (PyTorch norm)
    inv = lax.rsqrt(var + 1e-5)
    scale = (params["bn_gamma"] * inv).reshape(1, cout, 1).astype(jnp.float32)
    shift = (params["bn_beta"] - mean * params["bn_gamma"] * inv) \
        .reshape(1, cout, 1).astype(jnp.float32)

    bn_bytes = int(2 * B * cout * HW * 4 + 2 * cout * 4)
    out = pl.pallas_call(
        _bn_relu_kernel,
        out_shape=jax.ShapeDtypeStruct((B, cout, HW), jnp.float32),
        grid_spec=pltpu.PrefetchScalarGridSpec(
            num_scalar_prefetch=0,
            grid=(B, nhw),
            in_specs=[
                pl.BlockSpec((1, cout, HWt), lambda b, hi: (b, 0, hi)),
                pl.BlockSpec((1, cout, 1), lambda b, hi: (0, 0, 0)),
                pl.BlockSpec((1, cout, 1), lambda b, hi: (0, 0, 0)),
            ],
            out_specs=pl.BlockSpec((1, cout, HWt), lambda b, hi: (b, 0, hi)),
        ),
        compiler_params=pltpu.CompilerParams(
            dimension_semantics=("parallel", "parallel")),
        cost_estimate=pl.CostEstimate(flops=2 * B * cout * HW, transcendentals=0,
                                      bytes_accessed=bn_bytes),
    )(core_out, scale, shift)

    return out.reshape(B, cout, H, W)


# ----------------------------------------------------------------------------
# Pure-JAX reference (same bf16 inputs, f32 accumulation) for a sanity check
# ----------------------------------------------------------------------------
def _reference_forward(x, y, params, *, cout, kernel_size, region_num=2,
                       hidden_scale=8, guide_ksize=5, conv_padding=None):
    wmat, patches, guide, meta = _prepare_core_inputs(
        x, y, params, cout=cout, kernel_size=kernel_size, region_num=region_num,
        hidden_scale=hidden_scale, guide_ksize=guide_ksize, conv_padding=conv_padding)
    B, H, W = meta["B"], meta["H"], meta["W"]
    acc = jnp.einsum("brk,bkh->brh", wmat, patches,
                     preferred_element_type=jnp.float32)
    mask0 = guide >= (1.0 - guide)
    sel = jnp.where(mask0, acc[:, :cout, :], acc[:, cout:, :])
    mean = jnp.mean(sel, axis=(0, 2), keepdims=True)
    var = jnp.mean(jnp.square(sel - mean), axis=(0, 2), keepdims=True)
    out = (sel - mean) * lax.rsqrt(var + 1e-5) \
        * params["bn_gamma"].reshape(1, cout, 1) \
        + params["bn_beta"].reshape(1, cout, 1)
    return jnp.maximum(out, 0.0).reshape(B, cout, H, W)


# ----------------------------------------------------------------------------
# Demo
# ----------------------------------------------------------------------------
if __name__ == "__main__":
    B, Cin, Cout, H, W = 2, 4, 8, 16, 16
    KERNEL_SIZE = 3      # dynamic correlation kernel size (padding=1 -> 'same')
    REGION_NUM = 2
    HIDDEN_SCALE = 8
    GUIDE_KSIZE = 5      # HAGuide gaussian kernel size

    key = jax.random.PRNGKey(0)
    kx, ky, kp = jax.random.split(key, 3)
    x = jax.random.normal(kx, (B, Cin, H, W), jnp.float32)     # feat
    y = jax.random.normal(ky, (B, 1, H, W), jnp.float32)       # prediction logit

    params = init_params(kp, Cin, Cout, REGION_NUM, HIDDEN_SCALE)

    kw = dict(cout=Cout, kernel_size=KERNEL_SIZE, region_num=REGION_NUM,
              hidden_scale=HIDDEN_SCALE, guide_ksize=GUIDE_KSIZE,
              conv_padding=KERNEL_SIZE // 2)

    out = sconv_nr_forward(x, y, params, **kw)
    jax.block_until_ready(out)
    assert out.shape == (B, Cout, H, W)
    assert bool(jnp.all(out >= 0.0))  # ReLU output

    ref = _reference_forward(x, y, params, **kw)
    err = float(jnp.max(jnp.abs(out - ref)))
    assert err < 5e-2, f"mismatch vs pure-JAX reference: max abs err {err}"
    print("KERNEL_OK")
</pallas_src>

<mosaic_0001>
module attributes {stable_mosaic.version = 11 : i64} {
  func.func @_sconv_core_kernel(%arg0: i32, %arg1: i32, %arg2: memref<2x16x40xbf16, #tpu.memory_space<vmem>>, %arg3: memref<2x40x256xbf16, #tpu.memory_space<vmem>>, %arg4: memref<2x1x256xf32, #tpu.memory_space<vmem>>, %arg5: memref<2x8x256xf32, #tpu.memory_space<vmem>>, %arg6: memref<2x8x1xf32, #tpu.memory_space<vmem>>, %arg7: memref<2x8x1xf32, #tpu.memory_space<vmem>>) attributes {dimension_semantics = [#tpu.dimension_semantics<parallel>, #tpu.dimension_semantics<arbitrary>], iteration_bounds = array<i64: 1, 1>, scalar_prefetch = 0 : i64, scratch_operands = 0 : i64, tpu.core_type = #tpu.core_type<tc>, window_params = [{transform_indices = @transform_0, window_bounds = array<i64: 2, 16, 40>}, {transform_indices = @transform_1, window_bounds = array<i64: 2, 40, 256>}, {transform_indices = @transform_2, window_bounds = array<i64: 2, 1, 256>}, {transform_indices = @transform_3, window_bounds = array<i64: 2, 8, 256>}, {transform_indices = @transform_4, window_bounds = array<i64: 2, 8, 1>}, {transform_indices = @transform_5, window_bounds = array<i64: 2, 8, 1>}]} {
    %c0_i32 = arith.constant 0 : i32
    %0 = arith.cmpi eq, %arg1, %c0_i32 : i32
    %1 = arith.extui %0 : i1 to i32
    %c0_i32_0 = arith.constant 0 : i32
    %2 = arith.cmpi ne, %1, %c0_i32_0 : i32
    scf.if %2 {
      %cst_27 = arith.constant 0.000000e+00 : f32
      %27 = vector.broadcast %cst_27 : f32 to vector<2x8x1xf32>
      %c0_28 = arith.constant 0 : index
      %c0_29 = arith.constant 0 : index
      %c0_30 = arith.constant 0 : index
      %28 = vector.load %arg6[%c0_28, %c0_29, %c0_30] : memref<2x8x1xf32, #tpu.memory_space<vmem>>, vector<2x8x1xf32>
      tpu.vector_store %arg6[%c0_28, %c0_29, %c0_30], %27 {strides = array<i32>} : memref<2x8x1xf32, #tpu.memory_space<vmem>>, vector<2x8x1xf32>,
      %cst_31 = arith.constant 0.000000e+00 : f32
      %29 = vector.broadcast %cst_31 : f32 to vector<2x8x1xf32>
      %c0_32 = arith.constant 0 : index
      %c0_33 = arith.constant 0 : index
      %c0_34 = arith.constant 0 : index
      %30 = vector.load %arg7[%c0_32, %c0_33, %c0_34] : memref<2x8x1xf32, #tpu.memory_space<vmem>>, vector<2x8x1xf32>
      tpu.vector_store %arg7[%c0_32, %c0_33, %c0_34], %29 {strides = array<i32>} : memref<2x8x1xf32, #tpu.memory_space<vmem>>, vector<2x8x1xf32>,
    } else {
    }
    %c0 = arith.constant 0 : index
    %c0_1 = arith.constant 0 : index
    %c0_2 = arith.constant 0 : index
    %3 = vector.load %arg2[%c0, %c0_1, %c0_2] : memref<2x16x40xbf16, #tpu.memory_space<vmem>>, vector<2x16x40xbf16>
    %c0_3 = arith.constant 0 : index
    %c0_4 = arith.constant 0 : index
    %c0_5 = arith.constant 0 : index
    %4 = vector.load %arg3[%c0_3, %c0_4, %c0_5] : memref<2x40x256xbf16, #tpu.memory_space<vmem>>, vector<2x40x256xbf16>
    "tpu.trace_start"() <{level = 10 : i32, message = "brk,bkh->brh"}> : () -> ()
    %cst = arith.constant dense<0.000000e+00> : vector<2x16x256xf32>
    %5 = tpu.matmul %3, %4, %cst {dimension_numbers = #tpu.dot_dimension_numbers<[2], [1], [1], [2], [0, 0, 0, 1, 1, 2], [0], [0]>} : vector<2x16x40xbf16>, vector<2x40x256xbf16>, vector<2x16x256xf32> -> vector<2x16x256xf32>
    "tpu.trace_stop"() : () -> ()
    %c0_6 = arith.constant 0 : index
    %c0_7 = arith.constant 0 : index
    %c0_8 = arith.constant 0 : index
    %6 = vector.load %arg4[%c0_6, %c0_7, %c0_8] : memref<2x1x256xf32, #tpu.memory_space<vmem>>, vector<2x1x256xf32>
    %cst_9 = arith.constant 1.000000e+00 : f32
    %7 = vector.broadcast %cst_9 : f32 to vector<2x1x256xf32>
    %8 = arith.subf %7, %6 : vector<2x1x256xf32>
    %9 = arith.cmpf oge, %6, %8 : vector<2x1x256xf32>
    %10 = vector.extract_strided_slice %5 {offsets = [0, 0, 0], sizes = [2, 8, 256], strides = [1, 1, 1]} : vector<2x16x256xf32> to vector<2x8x256xf32>
    %11 = vector.extract_strided_slice %5 {offsets = [0, 8, 0], sizes = [2, 8, 256], strides = [1, 1, 1]} : vector<2x16x256xf32> to vector<2x8x256xf32>
    %12 = vector.shape_cast %9 : vector<2x1x256xi1> to vector<2x1x256xi1>
    %13 = vector.broadcast %12 : vector<2x1x256xi1> to vector<2x8x256xi1>
    %14 = arith.select %13, %10, %11 : vector<2x8x256xi1>, vector<2x8x256xf32>
    %c0_10 = arith.constant 0 : index
    %c0_11 = arith.constant 0 : index
    %c0_12 = arith.constant 0 : index
    %15 = vector.load %arg5[%c0_10, %c0_11, %c0_12] : memref<2x8x256xf32, #tpu.memory_space<vmem>>, vector<2x8x256xf32>
    tpu.vector_store %arg5[%c0_10, %c0_11, %c0_12], %14 {strides = array<i32>} : memref<2x8x256xf32, #tpu.memory_space<vmem>>, vector<2x8x256xf32>,
    %c0_13 = arith.constant 0 : index
    %c0_14 = arith.constant 0 : index
    %c0_15 = arith.constant 0 : index
    %16 = vector.load %arg6[%c0_13, %c0_14, %c0_15] : memref<2x8x1xf32, #tpu.memory_space<vmem>>, vector<2x8x1xf32>
    %cst_16 = arith.constant dense<0.000000e+00> : vector<2x8xf32>
    %17 = vector.multi_reduction <add>, %14, %cst_16 [2] : vector<2x8x256xf32> to vector<2x8xf32>
    %18 = vector.shape_cast %17 : vector<2x8xf32> to vector<2x8x1xf32>
    %19 = arith.addf %16, %18 : vector<2x8x1xf32>
    %c0_17 = arith.constant 0 : index
    %c0_18 = arith.constant 0 : index
    %c0_19 = arith.constant 0 : index
    %20 = vector.load %arg6[%c0_17, %c0_18, %c0_19] : memref<2x8x1xf32, #tpu.memory_space<vmem>>, vector<2x8x1xf32>
    tpu.vector_store %arg6[%c0_17, %c0_18, %c0_19], %19 {strides = array<i32>} : memref<2x8x1xf32, #tpu.memory_space<vmem>>, vector<2x8x1xf32>,
    %c0_20 = arith.constant 0 : index
    %c0_21 = arith.constant 0 : index
    %c0_22 = arith.constant 0 : index
    %21 = vector.load %arg7[%c0_20, %c0_21, %c0_22] : memref<2x8x1xf32, #tpu.memory_space<vmem>>, vector<2x8x1xf32>
    %22 = arith.mulf %14, %14 : vector<2x8x256xf32>
    %cst_23 = arith.constant dense<0.000000e+00> : vector<2x8xf32>
    %23 = vector.multi_reduction <add>, %22, %cst_23 [2] : vector<2x8x256xf32> to vector<2x8xf32>
    %24 = vector.shape_cast %23 : vector<2x8xf32> to vector<2x8x1xf32>
    %25 = arith.addf %21, %24 : vector<2x8x1xf32>
    %c0_24 = arith.constant 0 : index
    %c0_25 = arith.constant 0 : index
    %c0_26 = arith.constant 0 : index
    %26 = vector.load %arg7[%c0_24, %c0_25, %c0_26] : memref<2x8x1xf32, #tpu.memory_space<vmem>>, vector<2x8x1xf32>
    tpu.vector_store %arg7[%c0_24, %c0_25, %c0_26], %25 {strides = array<i32>} : memref<2x8x1xf32, #tpu.memory_space<vmem>>, vector<2x8x1xf32>,
    return
  }
  func.func @transform_0(%arg0: i32, %arg1: i32) -> (i32, i32, i32) {
    %c0_i32 = arith.constant 0 : i32
    %c0_i32_0 = arith.constant 0 : i32
    %c0_i32_1 = arith.constant 0 : i32
    return %arg0, %c0_i32, %c0_i32_0 : i32, i32, i32
  }
  func.func @transform_1(%arg0: i32, %arg1: i32) -> (i32, i32, i32) {
    %c0_i32 = arith.constant 0 : i32
    %c0_i32_0 = arith.constant 0 : i32
    return %arg0, %c0_i32, %arg1 : i32, i32, i32
  }
  func.func @transform_2(%arg0: i32, %arg1: i32) -> (i32, i32, i32) {
    %c0_i32 = arith.constant 0 : i32
    %c0_i32_0 = arith.constant 0 : i32
    return %arg0, %c0_i32, %arg1 : i32, i32, i32
  }
  func.func @transform_3(%arg0: i32, %arg1: i32) -> (i32, i32, i32) {
    %c0_i32 = arith.constant 0 : i32
    %c0_i32_0 = arith.constant 0 : i32
    return %arg0, %c0_i32, %arg1 : i32, i32, i32
  }
  func.func @transform_4(%arg0: i32, %arg1: i32) -> (i32, i32, i32) {
    %c0_i32 = arith.constant 0 : i32
    %c0_i32_0 = arith.constant 0 : i32
    %c0_i32_1 = arith.constant 0 : i32
    return %arg0, %c0_i32, %c0_i32_0 : i32, i32, i32
  }
  func.func @transform_5(%arg0: i32, %arg1: i32) -> (i32, i32, i32) {
    %c0_i32 = arith.constant 0 : i32
    %c0_i32_0 = arith.constant 0 : i32
    %c0_i32_1 = arith.constant 0 : i32
    return %arg0, %c0_i32, %c0_i32_0 : i32, i32, i32
  }
}

</mosaic_0001>

<bundles_post_ra>
// kernel: tpu_custom_call.1
= control target key start
LH: loop header
LB: loop body
LE: loop exit
PB: predicated region body
PF: predicated region fallthrough
CT: control target
= control target key end

     0   :  { %11 = vsyncpa [#allocation3], 0  ;;  %s573_s0 = inlined_call_operand.hbm [shape: bf16[2,16,40], index: 0, kind: input, shape index: {}]   ;;  %s574_s1 = inlined_call_operand.hbm [shape: bf16[2,40,256], index: 1, kind: input, shape index: {}]   ;;  %s575_s2 = inlined_call_operand.vmem [shape: f32[2,1,256], index: 2, kind: input, shape index: {}]   ;;  %s576_s3 = inlined_call_operand.hbm [shape: f32[2,8,256], index: 3, kind: output, shape index: {0}]   ;;  %s577_s4 = inlined_call_operand.vmem [shape: f32[2,8,1], index: 4, kind: output, shape index: {1}]   ;;  %s578_s5 = inlined_call_operand.vmem [shape: f32[2,8,1], index: 5, kind: output, shape index: {2}]  }
   0x1   :  { %12 = vsyncpa [#allocation6], 0 }
   0x2   :  { %13 = vsyncpa [#allocation4], 0  ;;  %s446_s18 = smov [#allocation2]   ;;  %s374_s22 = scalar_lea.hbm %s573_s0, 256 }
   0x3   :  { %s19_s19 = sshll.u32 %s446_s18, 4  ;;  %p375_p0 = scmp.ne.s32.totalorder %s573_s0, %s374_s22  ;;  %s20_s19 = int_to_ptr.vmem [resolvable:$true] %s19_s19 }
   0x4   :  { %p378_p1 = scmp.lt.u32.totalorder %s374_s22, %s573_s0 }
   0x6   :  { %p380_p2 = pnand %p378_p1, %p375_p0 }
   0x8   :  { %383 = shalt.err (!%p380_p2)
}
   0x9   :  { %s384_s27 = scalar_lea.vmem %s20_s19, 256  ;;  %p389_p4 = scmp.lt.s32.totalorder %s20_s19, %s20_s19 }
   0xa   :  { %p385_p3 = scmp.ne.s32.totalorder %s20_s19, %s384_s27  ;;  %p390_p5 = scmp.lt.s32.totalorder %s384_s27, %s384_s27 }
   0xc   :  { %p391_p6 = por %p390_p5, %p389_p4 }
   0xe   :  { %p392_p7 = pnand %p391_p6, %p385_p3 }
  0x10   :  { %395 = shalt.err (!%p392_p7)
}
  0x11   :  { %s447_s28 = smov 64   ;;  %s448_s29 = smov 4  }
  0x12   :  { %25 = dma.hbm_to_vmem [thread:$0]  %s573_s0, 256, %s20_s19, [#allocation3], %s447_s28, %s447_s28, %s448_s29  }
  0x13   :  { %s449_s7 = smov [#allocation5]   ;;  %s396_s11 = scalar_lea.hbm %s574_s1, 1280 }
  0x14   :  { %s31_s8 = sshll.u32 %s449_s7, 4  ;;  %p397_p8 = scmp.ne.s32.totalorder %s574_s1, %s396_s11  ;;  %s32_s8 = int_to_ptr.vmem [resolvable:$true] %s31_s8 }
  0x15   :  { %p400_p9 = scmp.lt.u32.totalorder %s396_s11, %s574_s1 }
  0x17   :  { %p402_p10 = pnand %p400_p9, %p397_p8 }
  0x19   :  { %405 = shalt.err (!%p402_p10)
}
  0x1a   :  { %s406_s16 = scalar_lea.vmem %s32_s8, 1280  ;;  %p411_p12 = scmp.lt.s32.totalorder %s32_s8, %s32_s8 }
  0x1b   :  { %p407_p11 = scmp.ne.s32.totalorder %s32_s8, %s406_s16  ;;  %p412_p13 = scmp.lt.s32.totalorder %s406_s16, %s406_s16 }
  0x1d   :  { %p413_p0 = por %p412_p13, %p411_p12 }
  0x1f   :  { %p414_p1 = pnand %p413_p0, %p407_p11 }
  0x21   :  { %417 = shalt.err (!%p414_p1)
}
  0x22   :  { %s450_s0 = smov 128   ;;  %s451_s17 = smov 8  }
  0x23   :  { %37 = dma.hbm_to_vmem [thread:$0]  %s574_s1, 1280, %s32_s8, [#allocation6], %s450_s0, %s450_s0, %s451_s17  }
  0x24   :  { %440 = dma.done.wait [#allocation3], 256  }
  0x25   :  { %441 = vsyncadd [#allocation3], 4294967040 }
  0x26   :  { %442 = dma.done.wait [#allocation6], 1280  }
  0x27   :  { %443 = vsyncadd [#allocation6], 4294966016  ;;  %v452_v0 = vmov 0   ;;  %v356_v1 = vld [vmem:[#allocation5 + $0x4] ss:$8 sps:$4 sm:$0xff]   ;;  %vm104_vm0 = vcmask 1043456   ;;  %v244_v21 = vlaneseq }
  0x28   :  { %143 = vmatprep.mubr.bf16.mxu0 %v452_v0  ;;  %225 = vmatprep.mubr.bf16.mxu1 %v452_v0  ;;  %v358_v2 = vld [vmem:[#allocation5] ss:$8 sps:$4 sm:$0xff]   ;;  %v359_v3 = vld [vmem:[#allocation5 + $0x2c] ss:$8 sps:$4 sm:$0xff]   ;;  %v364_v6 = vld [vmem:[#allocation5 + $0x10] ss:$8 sps:$4 sm:$0xff]  }
  0x29   :  { %111 = vmatprep.subr.bf16.mxu0 %v356_v1  ;;  %v361_v4 = vld [vmem:[#allocation5 + $0x28] ss:$8 sps:$4 sm:$0xff]   ;;  %v362_v5 = vld [vmem:[#allocation5 + $0x14] ss:$8 sps:$4 sm:$0xff]   ;;  %193 = vmatprep.subr.bf16.mxu1 %v359_v3  ;;  %v367_v8 = vld [vmem:[#allocation5 + $0x38] ss:$8 sps:$4 sm:$0xff]  }
  0x2a   :  { %112 = vmatpush1.bf16.msra.mxu0 %v358_v2  ;;  %v365_v7 = vld [vmem:[#allocation5 + $0x3c] ss:$8 sps:$4 sm:$0xff]   ;;  %194 = vmatpush1.bf16.msra.mxu1 %v361_v4  ;;  %v69_v10 = vld [vmem:[#allocation5 + $0x48] sm:$0xff]  ;;  %v372_v17 = vld [vmem:[#allocation2] sm:$0xff]   ;;  %vm100_vm1 = vcmask 326656   ;;  %vm51_vm2 = vcmask 7168  }
  0x2b   :  { %113 = vmatprep.subr.bf16.mxu0 %v362_v5  ;;  %v64_v9 = vld [vmem:[#allocation5 + $0x20] sm:$0xff]  ;;  %195 = vmatprep.subr.bf16.mxu1 %v365_v7  ;;  %v342_v13 = vcombine.high %v69_v10, %v69_v10  ;;  %v341_v14 = vcombine.low %v69_v10, %v69_v10  ;;  %v373_v18 = vld [vmem:[#allocation2 + $0x8] sm:$0xff]   ;;  %v453_v19 = vmov 0.0   ;;  %v236_v20 = vld [vmem:[%s575_s2] sm:$0x3]  ;;  %v245_v24 = vshrl.u32 %v244_v21, 7 }
  0x2c   :  { %v333_v11 = vcombine.high %v64_v9, %v64_v9  ;;  %v332_v12 = vcombine.low %v64_v9, %v64_v9  ;;  %52 = vst.msk [vmem:[%s577_s4] sm:$0xff] %vm51_vm2, %v453_v19  ;;  %53 = vst.msk [vmem:[%s577_s4 + $0x8] sm:$0xff] %vm51_vm2, %v453_v19  ;;  %v237_v22 = vld [vmem:[%s575_s2 + $0x2] sm:$0x3]  ;;  %v238_v23 = vsub.f32 1.0, %v236_v20  ;;  %s454_s2 = smov [#allocation7]  }
  0x2d   :  { %v188_v16 = vsel %vm104_vm0, %v341_v14, 0  ;;  %54 = vst.msk [vmem:[%s578_s5] sm:$0xff] %vm51_vm2, %v453_v19  ;;  %55 = vst.msk [vmem:[%s578_s5 + $0x8] sm:$0xff] %vm51_vm2, %v453_v19  ;;  %v239_v25 = vsub.f32 1.0, %v237_v22  ;;  %v246_v26 = vsub.s32 0, %v245_v24  ;;  %v250_v28 = vsub.s32 1, %v245_v24 }
  0x2e   :  { %114 = vmatpush1.bf16.msra.mxu0 %v364_v6  ;;  %v106_v15 = vsel %vm104_vm0, %v332_v12, 0  ;;  %196 = vmatpush1.bf16.msra.mxu1 %v367_v8  ;;  %vm240_vm3 = vcmp.ge.f32.partialorder %v236_v20, %v238_v23  ;;  %s306_s6 = sshll.u32 %s454_s2, 4  ;;  %s307_s6 = int_to_ptr.vmem [resolvable:$true] %s306_s6 }
  0x2f   :  { %334 = vmatprep.subr.msk.bf16.mxu0 %vm104_vm0, %v333_v11  ;;  %343 = vmatprep.subr.msk.bf16.mxu1 %vm104_vm0, %v342_v13  ;;  %vm241_vm4 = vcmp.ge.f32.partialorder %v237_v22, %v239_v25  ;;  %v242_v27 = vsel %vm240_vm3, 1, %v452_v0  ;;  %s418_s7 = scalar_lea.vmem %s307_s6, 512  ;;  %p423_p3 = scmp.lt.s32.totalorder %s307_s6, %s307_s6 }
  0x30   :  { %v243_v29 = vsel %vm241_vm4, 1, %v452_v0  ;;  %v247_v30 = vrot.slane %v242_v27, %v246_v26  ;;  %v251_v31 = vrot.slane %v242_v27, %v250_v28  ;;  %p419_p2 = scmp.ne.s32.totalorder %s307_s6, %s418_s7  ;;  %p424_p4 = scmp.lt.s32.totalorder %s418_s7, %s418_s7 }
  0x31   :  { %v255_v32 = vrot.slane %v243_v29, %v246_v26  ;;  %v259_v33 = vrot.slane %v243_v29, %v250_v28 }
  0x32   :  { %116 = vmatpush1.bf16.msra.mxu0 %v106_v15  ;;  %198 = vmatpush1.bf16.msra.mxu1 %v188_v16  ;;  %vm260_vm5 = vcmp.eq.s32.totalorder %v247_v30, 1  ;;  %vm261_vm6 = vcmp.eq.s32.totalorder %v251_v31, 1  ;;  %p425_p5 = por %p424_p4, %p423_p3 }
  0x33   :  { %vm262_vm7 = vcmp.eq.s32.totalorder %v255_v32, 1  ;;  %vm263_vm8 = vcmp.eq.s32.totalorder %v259_v33, 1 }
  0x34   :  { %p426_p6 = pnand %p425_p5, %p419_p2 }
  0x35   :  { %335 = vmatmul.mubr.msk.bf16.vlgmr.msra.gmra.mrb[0].mxu0 %vm100_vm1, %v372_v17  ;;  %344 = vmatmul.mubr.msk.bf16.vlgmr.msra.gmra.mrb[0].mxu1 %vm100_vm1, %v373_v18 }
 0x108   :  { %v145_v34 = vpop.f32.mrb[0].mxu0  ;;  %v227_v36 = vpop.f32.mrb[0].mxu1 }
 0x109   :  { %v147_v35 = vpop.f32.mrb[1].mxu0  ;;  %v229_v39 = vpop.f32.mrb[1].mxu1 }
 0x10a   :  { %v149_v37 = vpop.f32.mrb[2].mxu0  ;;  %v231_v42 = vpop.f32.mrb[2].mxu1 }
 0x10b   :  { %v264_v38 = vsel %vm260_vm5, %v145_v34, %v149_v37  ;;  %v151_v40 = vpop.f32.mrb[3].mxu0  ;;  %v266_v44 = vsel %vm262_vm7, %v227_v36, %v231_v42  ;;  %v233_v45 = vpop.f32.mrb[3].mxu1 }
 0x10c   :  { %268 = vst [vmem:[#allocation7] sm:$0xff] %v264_v38  ;;  %v265_v41 = vsel %vm261_vm6, %v147_v35, %v151_v40  ;;  %v287_v43 = vmul.f32 %v264_v38, %v264_v38  ;;  %270 = vst [vmem:[#allocation7 + $0x10] sm:$0xff] %v266_v44  ;;  %v267_v48 = vsel %vm263_vm8, %v229_v39, %v233_v45 }
 0x10d   :  { %269 = vst [vmem:[#allocation7 + $0x8] sm:$0xff] %v265_v41  ;;  %v274_v46 = vadd.f32 %v265_v41, %v264_v38  ;;  %v288_v47 = vmul.f32 %v265_v41, %v265_v41  ;;  %v289_v49 = vmul.f32 %v266_v44, %v266_v44  ;;  %271 = vst [vmem:[#allocation7 + $0x18] sm:$0xff] %v267_v48 }
 0x10e   :  { %v277_v51 = vadd.f32 %v267_v48, %v266_v44  ;;  %v290_v52 = vmul.f32 %v267_v48, %v267_v48 }
 0x10f   :  { %275 = vadd.xlane.f32.xlu0 %v274_v46  ;;  %v291_v50 = vadd.f32 %v288_v47, %v287_v43 }
 0x110   :  { %v294_v53 = vadd.f32 %v290_v52, %v289_v49 }
 0x111   :  { %292 = vadd.xlane.f32.xlu1 %v291_v50 }
 0x113   :  { %278 = vadd.xlane.f32.xlu0 %v277_v51 }
 0x115   :  { %295 = vadd.xlane.f32.xlu1 %v294_v53 }
 0x116   :  { %429 = shalt.err (!%p426_p6)
}
 0x117   :  { %s430_s10 = scalar_lea.hbm %s576_s3, 512 }
 0x118   :  { %p431_p7 = scmp.ne.s32.totalorder %s576_s3, %s430_s10  ;;  %p434_p8 = scmp.lt.u32.totalorder %s430_s10, %s576_s3 }
 0x11a   :  { %p436_p9 = pnand %p434_p8, %p431_p7 }
 0x11c   :  { %439 = shalt.err (!%p436_p9)
}
 0x11d   :  { %s455_s15 = smov 256   ;;  %s456_s16 = smov 16   ;;  %v272_v54 = vld [vmem:[%s577_s4] sm:$0xff]  ;;  %v273_v59 = vld [vmem:[%s577_s4 + $0x8] sm:$0xff] }
 0x11e   :  { %312 = dma.vmem_to_hbm [thread:$0]  %s307_s6, 512, %s576_s3, [#allocation4], %s455_s15, %s455_s15, %s456_s16  }
 0x11f   :  { %v285_v56 = vld [vmem:[%s578_s5] sm:$0xff]  ;;  %v286_v62 = vld [vmem:[%s578_s5 + $0x8] sm:$0xff] }
 0x19c   :  { %v276_v55 = vpop.xlane.xlu0 %275 }
 0x19d   :  { %v280_v57 = vadd.f32 %v276_v55, %v272_v54 }
 0x19e   :  { %v293_v58 = vpop.xlane.xlu1 %292 }
 0x19f   :  { %283 = vst.msk [vmem:[%s577_s4] sm:$0xff] %vm51_vm2, %v280_v57  ;;  %v297_v60 = vadd.f32 %v293_v58, %v285_v56 }
 0x1a0   :  { %v279_v61 = vpop.xlane.xlu0 %278 }
 0x1a1   :  { %299 = vst.msk [vmem:[%s578_s5] sm:$0xff] %vm51_vm2, %v297_v60  ;;  %v281_v63 = vadd.f32 %v279_v61, %v273_v59 }
 0x1a2   :  { %v296_v0 = vpop.xlane.xlu1 %295 }
 0x1a3   :  { %284 = vst.msk [vmem:[%s577_s4 + $0x8] sm:$0xff] %vm51_vm2, %v281_v63  ;;  %v298_v1 = vadd.f32 %v296_v0, %v286_v62 }
 0x1a5   :  { %300 = vst.msk [vmem:[%s578_s5 + $0x8] sm:$0xff] %vm51_vm2, %v298_v1 }
 0x1a6   :  { %444 = dma.done.wait [#allocation4], 512  }
 0x1a7   :  { %445 = vsyncadd [#allocation4], 4294966784 }
 0x1a8   :  { %324 = vsyncpa [#allocation3], 1 }
 0x1a9   :  { %325 = vsyncpa [#allocation6], 1 }
 0x1aa   :  { %326 = vsyncpa [#allocation4], 1 }

</bundles_post_ra>
